<compile_context>
chip_gen: v6e
topology: v6e:2x2x1
jax: 0.10.0
libtpu: 0.0.40
codegen_flags: <defaults>
</compile_context>

<pallas_src>
import jax
import jax.numpy as jnp
from jax.experimental import pallas as pl
from jax.experimental.pallas import tpu as pltpu

IN_FEATURES = 14 * 14   # 196
LANE = 128              # lane padding of the folded weight (MXU-friendly)


def fcnet_kernel(x_ref, w_ref, o_ref):
    # x_ref: (TILE_B, 196) f32   input tile
    # w_ref: (196, 128)   f32   folded weight, real data in column 0 only
    # o_ref: (TILE_B, 1)  f32   output tile (only 4 B/row written back to HBM)
    res = jnp.dot(x_ref[...], w_ref[...], preferred_element_type=jnp.float32)
    o_ref[...] = res[:, 0:1]


def fold_weights(weights):
    """Fold the 6 PyTorch-convention (out, in) weights into one (196, LANE)
    lane-padded fp32 matrix.  Done once, outside the forward hot path."""
    w_fold = weights[0].T                      # (196, 20)
    for w in weights[1:]:
        w_fold = w_fold @ w.T                  # ... -> (196, 1), all fp32
    in_f, out_f = w_fold.shape
    w_padded = jnp.zeros((in_f, LANE), jnp.float32)
    w_padded = w_padded.at[:, :out_f].set(w_fold)
    return w_padded


def fcnet_linear_forward(x, w_folded, *, tile_b=2048):
    """x: (B, 1, 14, 14) float32 (NCHW).  w_folded: (196, LANE) from
    fold_weights().  Returns (B, 1) float32, identical semantics to the
    PyTorch FCNetLinear forward (view + 6 bias-free Linears)."""
    B = x.shape[0]
    x_flat = x.reshape(B, -1)                  # (B, 196), matches x.view(B, -1)
    in_f = x_flat.shape[1]

    if B <= tile_b:
        # Single block covering the whole array: block == full dims is always
        # layout-legal, no padding needed even for tiny / odd B.
        tile = B
        grid = 1
    else:
        # Sublane-aligned tile; ragged last block is masked by Pallas (no
        # jnp.pad pass over the input).  grid >= 2 so v7x megacore can shard.
        tile = max(8, (tile_b // 8) * 8)
        grid = pl.cdiv(B, tile)

    out = pl.pallas_call(
        fcnet_kernel,
        out_shape=jax.ShapeDtypeStruct((B, 1), jnp.float32),
        grid=(grid,),
        in_specs=[
            pl.BlockSpec((tile, in_f), lambda i: (i, 0)),   # x tile (auto double-buffered)
            pl.BlockSpec((in_f, LANE), lambda i: (0, 0)),   # folded weight, VMEM-resident
        ],
        out_specs=pl.BlockSpec((tile, 1), lambda i: (i, 0)),
        compiler_params=pltpu.CompilerParams(
            dimension_semantics=("parallel",)),
    )(x_flat, w_folded)

    return out                                  # (B, 1)


def init_weights(key):
    """Deterministic init matching nn.Linear default: U(-1/sqrt(in), 1/sqrt(in)).
    Returned in PyTorch convention (out_features, in_features)."""
    dims = [(20, IN_FEATURES), (20, 20), (20, 20), (20, 20), (20, 20), (1, 20)]
    keys = jax.random.split(key, len(dims))
    weights = []
    for k, (out_f, in_f) in zip(keys, dims):
        bound = 1.0 / (in_f ** 0.5)
        weights.append(
            jax.random.uniform(k, (out_f, in_f), jnp.float32, -bound, bound))
    return weights


if __name__ == "__main__":
    key = jax.random.PRNGKey(0)
    k_x, k_w = jax.random.split(key)

    weights = init_weights(k_w)
    w_folded = fold_weights(weights)            # one-time, out of the hot path

    def reference(xx):
        h = xx.reshape(xx.shape[0], -1)
        for w in weights:                       # original un-folded 6-layer chain
            h = h @ w.T
        return h

    # Small shape implied by the module: MNIST-style 14x14 single channel.
    B = 2
    x = jax.random.normal(k_x, (B, 1, 14, 14), jnp.float32)  # NCHW
    y = fcnet_linear_forward(x, w_folded)
    jax.block_until_ready(y)
    assert y.shape == (B, 1)
    assert jnp.allclose(y, reference(x), atol=1e-4, rtol=1e-4)

    # Exercise the multi-tile + ragged-last-block path (no input padding).
    B2 = 20
    x2 = jax.random.normal(jax.random.PRNGKey(1), (B2, 1, 14, 14), jnp.float32)
    y2 = fcnet_linear_forward(x2, w_folded, tile_b=8)   # grid=3, last block ragged
    jax.block_until_ready(y2)
    assert y2.shape == (B2, 1)
    assert jnp.allclose(y2, reference(x2), atol=1e-4, rtol=1e-4)

    print("KERNEL_OK")
</pallas_src>

<mosaic_0001>
module attributes {stable_mosaic.version = 11 : i64} {
  func.func @fcnet_kernel(%arg0: i32, %arg1: memref<2x196xf32, #tpu.memory_space<vmem>>, %arg2: memref<196x128xf32, #tpu.memory_space<vmem>>, %arg3: memref<2x1xf32, #tpu.memory_space<vmem>>) attributes {dimension_semantics = [#tpu.dimension_semantics<parallel>], iteration_bounds = array<i64: 1>, scalar_prefetch = 0 : i64, scratch_operands = 0 : i64, tpu.core_type = #tpu.core_type<tc>, window_params = [{transform_indices = @transform_0, window_bounds = array<i64: 2, 196>}, {pipeline_mode = #tpu.pipeline_mode<synchronous>, transform_indices = @transform_1, window_bounds = array<i64: 196, 128>}, {transform_indices = @transform_2, window_bounds = array<i64: 2, 1>}]} {
    %c0 = arith.constant 0 : index
    %c0_0 = arith.constant 0 : index
    %0 = vector.load %arg1[%c0, %c0_0] : memref<2x196xf32, #tpu.memory_space<vmem>>, vector<2x196xf32>
    %c0_1 = arith.constant 0 : index
    %c0_2 = arith.constant 0 : index
    %1 = vector.load %arg2[%c0_1, %c0_2] : memref<196x128xf32, #tpu.memory_space<vmem>>, vector<196x128xf32>
    %cst = arith.constant dense<0.000000e+00> : vector<2x128xf32>
    %2 = tpu.matmul %0, %1, %cst {dimension_numbers = #tpu.dot_dimension_numbers<[1], [0], [0], [1], [0, 0, 1, 1], [], []>} : vector<2x196xf32>, vector<196x128xf32>, vector<2x128xf32> -> vector<2x128xf32>
    %3 = vector.extract_strided_slice %2 {offsets = [0, 0], sizes = [2, 1], strides = [1, 1]} : vector<2x128xf32> to vector<2x1xf32>
    %c0_3 = arith.constant 0 : index
    %c0_4 = arith.constant 0 : index
    %4 = vector.load %arg3[%c0_3, %c0_4] : memref<2x1xf32, #tpu.memory_space<vmem>>, vector<2x1xf32>
    tpu.vector_store %arg3[%c0_3, %c0_4], %3 {strides = array<i32>} : memref<2x1xf32, #tpu.memory_space<vmem>>, vector<2x1xf32>,
    return
  }
  func.func @transform_0(%arg0: i32) -> (i32, i32) {
    %c0_i32 = arith.constant 0 : i32
    %c0_i32_0 = arith.constant 0 : i32
    return %arg0, %c0_i32 : i32, i32
  }
  func.func @transform_1(%arg0: i32) -> (i32, i32) {
    %c0_i32 = arith.constant 0 : i32
    %c0_i32_0 = arith.constant 0 : i32
    %c0_i32_1 = arith.constant 0 : i32
    return %c0_i32, %c0_i32_0 : i32, i32
  }
  func.func @transform_2(%arg0: i32) -> (i32, i32) {
    %c0_i32 = arith.constant 0 : i32
    %c0_i32_0 = arith.constant 0 : i32
    return %arg0, %c0_i32 : i32, i32
  }
}

</mosaic_0001>

<bundles_post_ra>
// kernel: tpu_custom_call.1
= control target key start
LH: loop header
LB: loop body
LE: loop exit
PB: predicated region body
PF: predicated region fallthrough
CT: control target
= control target key end

     0   :  { %7 = vsyncpa [#allocation3], 0  ;;  %s269_s0 = inlined_call_operand.hbm [shape: f32[2,196], index: 0, kind: input, shape index: {}]   ;;  %s270_s1 = inlined_call_operand.hbm [shape: f32[196,128], index: 1, kind: input, shape index: {}]   ;;  %s271_s2 = inlined_call_operand.vmem [shape: f32[2,1], index: 2, kind: output, shape index: {}]  }
   0x1   :  { %8 = vsyncpa [#allocation5], 0  ;;  %s210_s9 = smov [#allocation2]   ;;  %s211_s11 = smov [#allocation4]  }
   0x2   :  { %s15_s10 = sshll.u32 %s210_s9, 4  ;;  %s24_s12 = sshll.u32 %s211_s11, 4  ;;  %s16_s10 = int_to_ptr.vmem [resolvable:$true] %s15_s10  ;;  %s25_s12 = int_to_ptr.vmem [resolvable:$true] %s24_s12 }
   0x3   :  { %s174_s13 = scalar_lea.vmem %s16_s10, 64  ;;  %p179_p1 = scmp.lt.s32.totalorder %s16_s10, %s16_s10 }
   0x4   :  { %p175_p0 = scmp.ne.s32.totalorder %s16_s10, %s174_s13  ;;  %p180_p2 = scmp.lt.s32.totalorder %s174_s13, %s174_s13 }
   0x6   :  { %p181_p3 = por %p180_p2, %p179_p1 }
   0x8   :  { %p182_p4 = pnand %p181_p3, %p175_p0 }
   0xa   :  { %185 = shalt.err (!%p182_p4)
}
   0xb   :  { %18 = dma.hbm_to_vmem [thread:$0]  %s269_s0, 64, %s16_s10, [#allocation3]  }
   0xc   :  { %s194_s16 = scalar_lea.vmem %s25_s12, 3200  ;;  %p199_p6 = scmp.lt.s32.totalorder %s25_s12, %s25_s12 }
   0xd   :  { %p195_p5 = scmp.ne.s32.totalorder %s25_s12, %s194_s16  ;;  %p200_p7 = scmp.lt.s32.totalorder %s194_s16, %s194_s16 }
   0xf   :  { %p201_p8 = por %p200_p7, %p199_p6 }
  0x11   :  { %p202_p9 = pnand %p201_p8, %p195_p5 }
  0x13   :  { %205 = shalt.err (!%p202_p9)
}
  0x14   :  { %s212_s17 = smov 128   ;;  %s213_s18 = smov 8  }
  0x15   :  { %30 = dma.hbm_to_vmem [thread:$0]  %s270_s1, 3200, %s25_s12, [#allocation5], %s212_s17, %s212_s17, %s213_s18  }
  0x16   :  { %206 = dma.done.wait [#allocation3], 64  }
  0x17   :  { %207 = vsyncadd [#allocation3], 4294967232 }
  0x18   :  { %208 = dma.done.wait [#allocation5], 3200  }
  0x19   :  { %209 = vsyncadd [#allocation5], 4294964096  ;;  %v214_v0 = vmov 0.0   ;;  %v53_v1 = vld [vmem:[#allocation4 + $0x78] sm:$0xff]  ;;  %v52_v2 = vld [vmem:[#allocation4 + $0x70] sm:$0xff]  ;;  %vm73_vm0 = vcmask 556032  }
  0x1a   :  { %80 = vmatprep.subr.mxu0 %v214_v0  ;;  %v51_v3 = vld [vmem:[#allocation4 + $0x68] sm:$0xff]  ;;  %v50_v4 = vld [vmem:[#allocation4 + $0x60] sm:$0xff]  ;;  %v49_v5 = vld [vmem:[#allocation4 + $0x58] sm:$0xff]  ;;  %vm76_vm1 = vcmask 1043456   ;;  %vm150_vm2 = vcmask 1024  }
  0x1b   :  { %81 = vmatpush1.msra.mxu0 %v53_v1  ;;  %v48_v6 = vld [vmem:[#allocation4 + $0x50] sm:$0xff]  ;;  %v241_v7 = vld.sshfl [vmem:[#allocation2] sm:$0x33 pattern:$0x76325410]  ;;  %v47_v9 = vld [vmem:[#allocation4 + $0x48] sm:$0xff] }
  0x1c   :  { %82 = vmatprep.subr.mxu0 %v214_v0  ;;  %v71_v8 = vcombine.high %v241_v7, %v241_v7  ;;  %v46_v10 = vld [vmem:[#allocation4 + $0x40] sm:$0xff]  ;;  %v45_v11 = vld [vmem:[#allocation4 + $0x38] sm:$0xff]  ;;  %v44_v12 = vld [vmem:[#allocation4 + $0x30] sm:$0xff] }
  0x1d   :  { %83 = vmatpush1.msra.mxu0 %v52_v2  ;;  %v43_v13 = vld [vmem:[#allocation4 + $0x28] sm:$0xff]  ;;  %v42_v14 = vld [vmem:[#allocation4 + $0x20] sm:$0xff]  ;;  %v41_v15 = vld [vmem:[#allocation4 + $0x18] sm:$0xff] }
  0x1e   :  { %84 = vmatprep.subr.mxu0 %v214_v0  ;;  %160 = vmatprep.mubr.msk.f32.mxu0 %vm73_vm0, %v71_v8  ;;  %v40_v16 = vld [vmem:[#allocation4 + $0x10] sm:$0xff]  ;;  %v39_v17 = vld [vmem:[#allocation4 + $0x8] sm:$0xff]  ;;  %v38_v18 = vld [vmem:[#allocation4] sm:$0xff] }
  0x1f   :  { %85 = vmatpush1.msra.mxu0 %v51_v3  ;;  %v62_v19 = vld [vmem:[#allocation4 + $0xc0] sm:$0xf]  ;;  %v61_v20 = vld [vmem:[#allocation4 + $0xb8] sm:$0xff]  ;;  %v60_v21 = vld [vmem:[#allocation4 + $0xb0] sm:$0xff] }
  0x20   :  { %86 = vmatprep.subr.mxu0 %v214_v0  ;;  %v59_v22 = vld [vmem:[#allocation4 + $0xa8] sm:$0xff]  ;;  %v58_v23 = vld [vmem:[#allocation4 + $0xa0] sm:$0xff]  ;;  %v57_v24 = vld [vmem:[#allocation4 + $0x98] sm:$0xff] }
  0x21   :  { %87 = vmatpush1.msra.mxu0 %v50_v4  ;;  %v56_v25 = vld [vmem:[#allocation4 + $0x90] sm:$0xff]  ;;  %v55_v26 = vld [vmem:[#allocation4 + $0x88] sm:$0xff]  ;;  %v54_v27 = vld [vmem:[#allocation4 + $0x80] sm:$0xff] }
  0x22   :  { %88 = vmatprep.subr.mxu0 %v214_v0 }
  0x23   :  { %89 = vmatpush1.msra.mxu0 %v49_v5 }
  0x24   :  { %90 = vmatprep.subr.mxu0 %v214_v0 }
  0x25   :  { %91 = vmatpush1.msra.mxu0 %v48_v6 }
  0x26   :  { %92 = vmatprep.subr.mxu0 %v214_v0 }
  0x27   :  { %93 = vmatpush1.msra.mxu0 %v47_v9 }
  0x28   :  { %94 = vmatprep.subr.mxu0 %v214_v0 }
  0x29   :  { %95 = vmatpush1.msra.mxu0 %v46_v10 }
  0x2a   :  { %96 = vmatprep.subr.mxu0 %v214_v0 }
  0x2b   :  { %97 = vmatpush1.msra.mxu0 %v45_v11 }
  0x2c   :  { %98 = vmatprep.subr.mxu0 %v214_v0 }
  0x2d   :  { %99 = vmatpush1.msra.mxu0 %v44_v12 }
  0x2e   :  { %100 = vmatprep.subr.mxu0 %v214_v0 }
  0x2f   :  { %101 = vmatpush1.msra.mxu0 %v43_v13 }
  0x30   :  { %102 = vmatprep.subr.mxu0 %v214_v0 }
  0x31   :  { %103 = vmatpush1.msra.mxu0 %v42_v14 }
  0x32   :  { %104 = vmatprep.subr.mxu0 %v214_v0 }
  0x33   :  { %105 = vmatpush1.msra.mxu0 %v41_v15 }
  0x34   :  { %106 = vmatprep.subr.mxu0 %v214_v0 }
  0x35   :  { %107 = vmatpush1.msra.mxu0 %v40_v16 }
  0x36   :  { %108 = vmatprep.subr.mxu0 %v214_v0 }
  0x37   :  { %109 = vmatpush1.msra.mxu0 %v39_v17 }
  0x38   :  { %110 = vmatprep.subr.mxu0 %v214_v0 }
  0x39   :  { %111 = vmatpush1.msra.mxu0 %v38_v18 }
  0x3a   :  { %126 = vmatprep.subr.mxu0 %v214_v0 }
  0x3b   :  { %159 = vmatpush2.msk.msra.mxu0 %vm76_vm1, %v62_v19 }
  0x3c   :  { %128 = vmatprep.subr.mxu0 %v214_v0 }
  0x3d   :  { %129 = vmatpush2.msra.mxu0 %v61_v20 }
  0x3e   :  { %130 = vmatprep.subr.mxu0 %v214_v0 }
  0x3f   :  { %131 = vmatpush2.msra.mxu0 %v60_v21 }
  0x40   :  { %132 = vmatprep.subr.mxu0 %v214_v0 }
  0x41   :  { %133 = vmatpush2.msra.mxu0 %v59_v22 }
  0x42   :  { %134 = vmatprep.subr.mxu0 %v214_v0 }
  0x43   :  { %135 = vmatpush2.msra.mxu0 %v58_v23 }
  0x44   :  { %136 = vmatprep.subr.mxu0 %v214_v0 }
  0x45   :  { %137 = vmatpush2.msra.mxu0 %v57_v24 }
  0x46   :  { %138 = vmatprep.subr.mxu0 %v214_v0 }
  0x47   :  { %139 = vmatpush2.msra.mxu0 %v56_v25 }
  0x48   :  { %140 = vmatprep.subr.mxu0 %v214_v0 }
  0x49   :  { %141 = vmatpush2.msra.mxu0 %v55_v26 }
  0x4a   :  { %142 = vmatprep.subr.mxu0 %v214_v0 }
  0x4b   :  { %143 = vmatpush2.msra.mxu0 %v54_v27 }
  0x4c   :  { %145 = vmatmul.mubr.f32.vlgmr.msra.gmra.mxu0 %v241_v7 }
 0x10c   :  { %v146_v28 = vpop.f32.mrf.mxu0 }
 0x10d   :  { %151 = vst.msk [vmem:[%s271_s2] sm:$0x3] %vm150_vm2, %v146_v28 }
 0x10e   :  { %v148_v29 = vpop.f32.mrf.mxu0 }
 0x10f   :  { %156 = vsyncpa [#allocation3], 1 }
 0x110   :  { %157 = vsyncpa [#allocation5], 1 }

</bundles_post_ra>
